<compile_context>
chip_gen: v7x
topology: tpu7x:2x2x1
jax: 0.10.0
libtpu: 0.0.40
codegen_flags: <defaults>
</compile_context>

<pallas_src>
import functools

import jax
import jax.numpy as jnp
from jax.experimental import pallas as pl
from jax.experimental.pallas import tpu as pltpu


def _cdiv(a, b):
    return -(-a // b)


def _mean_pool_kernel(h_ref, m_ref, inv_ref, o_ref, *, seq_len, seq_tile, ragged_seq):
    # h_ref:   (tb, ts, th)  hidden states, native dtype (bf16 stays bf16 on the wire)
    # m_ref:   (tb, 1, ts)   attention mask in h.dtype, lane-dense
    # inv_ref: (tb, 1, 1)    f32  1 / clamp(sum(mask), 1e-9)  (precomputed in wrapper)
    # o_ref:   (tb, 1, th)   f32 output; doubles as the resident accumulator
    s = pl.program_id(2)

    @pl.when(s == 0)
    def _init():
        o_ref[...] = jnp.zeros_like(o_ref)

    h = h_ref[...]
    if ragged_seq:
        # S % ts != 0: the last seq block's tail columns are unspecified bits
        # (possibly NaN/Inf) and 0 * NaN = NaN, so they must be killed with a
        # select (the zero mask alone is not enough).  Cheap VPU work, fully
        # hidden behind the HBM-bound DMA.
        col = jax.lax.broadcasted_iota(jnp.int32, (1, seq_tile, 1), 1) + s * seq_tile
        h = jnp.where(col < seq_len, h, jnp.zeros_like(h))

    # Masked sum over the seq axis as an MXU contraction with f32 accumulation,
    # accumulated directly into the resident f32 output block.
    o_ref[...] += jnp.einsum(
        "bqs,bsh->bqh", m_ref[...], h, preferred_element_type=jnp.float32)

    @pl.when(s == pl.num_programs(2) - 1)
    def _finalize():
        o_ref[...] = o_ref[...] * inv_ref[...]


def mean_pooling(last_hidden_state, attention_mask, *,
                 seq_tile=None, batch_tile=None,
                 vmem_budget_bytes=16 * 1024 * 1024):
    """Masked mean over axis 1. last_hidden_state: (B, S, H); attention_mask: (B, S)."""
    B, S, H = last_hidden_state.shape
    h_dtype = last_hidden_state.dtype
    itemsize = jnp.dtype(h_dtype).itemsize

    # Exact denominator precomputed once (B scalars): removes per-tile count /
    # clamp / reciprocal from the kernel.  Matches torch.clamp(min=1e-9).
    mask_f32 = attention_mask.astype(jnp.float32)
    inv_denom = (1.0 / jnp.maximum(jnp.sum(mask_f32, axis=1), 1e-9)).reshape(B, 1, 1)

    # ---- batch tile (leading block dim; ragged last block is free: no padding) ----
    tb = int(batch_tile) if batch_tile is not None else min(B, 8)
    # Large-H guard: shrink tb (instead of flooring ts at 128) so even a 128-row
    # seq tile fits the VMEM budget once double-buffered.
    while tb > 1 and 128 * tb * H * itemsize > vmem_budget_bytes:
        tb = (tb + 1) // 2
    nb = _cdiv(B, tb)

    # ---- guarantee >=2 "parallel" grid steps so both v7x TensorCores get work ----
    nh, th = 1, H
    if nb == 1:
        if B >= 2:
            tb = (B + 1) // 2
            nb = _cdiv(B, tb)
        elif H % 256 == 0:            # B == 1: split H lane-dense (each half % 128 == 0)
            nh, th = 2, H // 2

    # ---- seq tile (reduction axis, innermost grid dim) ----
    if seq_tile is not None:
        ts = min(int(seq_tile), S)
    else:
        row_bytes = max(1, tb * th * itemsize)
        if S * row_bytes <= vmem_budget_bytes:
            ts = S                                          # whole sequence per step
        else:
            ts = max(128, (vmem_budget_bytes // row_bytes) // 128 * 128)
            ts = min(ts, S)
    ns = _cdiv(S, ts)
    ragged_seq = (S % ts) != 0

    # Only the tiny (B, S) mask is ever padded/copied; the big hidden tensor is
    # passed straight through (no extra HBM traffic).
    S_pad = ns * ts
    m = attention_mask.astype(h_dtype)                      # bf16 mask halves its DMA
    if S_pad != S:
        m = jnp.pad(m, ((0, 0), (0, S_pad - S)))
    m3 = m.reshape(B, 1, S_pad)                             # lane-dense mask layout

    grid = (nb, nh, ns)

    # VMEM: input/output blocks are double-buffered; leave headroom and stay
    # under v7x's 64 MiB physical VMEM (v5e/v6e have 128 MiB, so this is safe).
    h_blk = tb * ts * th * itemsize
    small_blk = tb * ts * itemsize + tb * th * 4 + tb * 4   # mask + out + inv blocks
    vmem_limit = int(min(max(2 * (h_blk + small_blk) + (4 << 20), 32 << 20), 56 << 20))

    cost = pl.CostEstimate(
        flops=2 * B * S * H,
        transcendentals=0,
        bytes_accessed=B * S * H * itemsize + B * S_pad * itemsize + B * H * 4 + B * 4,
    )

    kernel = functools.partial(
        _mean_pool_kernel, seq_len=S, seq_tile=ts, ragged_seq=ragged_seq)

    out3 = pl.pallas_call(
        kernel,
        out_shape=jax.ShapeDtypeStruct((B, 1, H), jnp.float32),
        grid_spec=pltpu.PrefetchScalarGridSpec(
            num_scalar_prefetch=0,
            grid=grid,
            in_specs=[
                pl.BlockSpec((tb, ts, th), lambda i, hj, s: (i, s, hj)),
                pl.BlockSpec((tb, 1, ts), lambda i, hj, s: (i, 0, s)),
                pl.BlockSpec((tb, 1, 1), lambda i, hj, s: (i, 0, 0)),
            ],
            out_specs=pl.BlockSpec((tb, 1, th), lambda i, hj, s: (i, 0, hj)),
        ),
        compiler_params=pltpu.CompilerParams(
            dimension_semantics=("parallel", "parallel", "arbitrary"),
            vmem_limit_bytes=vmem_limit,
        ),
        cost_estimate=cost,
    )(last_hidden_state, m3, inv_denom)

    return out3[:, 0, :]


if __name__ == "__main__":
    key = jax.random.PRNGKey(0)
    k1, k2, k3, k4, k5, k6, k7, k8 = jax.random.split(key, 8)

    def reference(hh, mm):
        me = mm.astype(jnp.float32)[:, :, None]
        hs = hh.astype(jnp.float32)
        return jnp.sum(hs * me, axis=1) / jnp.maximum(jnp.sum(me, axis=1), 1e-9)

    # Case 1: tiny shapes (module convention); single seq step, batch split -> 2 parallel steps.
    B, S, H = 2, 8, 32
    h1 = jax.random.normal(k1, (B, S, H), dtype=jnp.float32)
    m1 = (jax.random.uniform(k2, (B, S)) > 0.3).astype(jnp.float32)
    out1 = jax.block_until_ready(mean_pooling(h1, m1))
    assert out1.shape == (B, H)
    assert jnp.allclose(out1, reference(h1, m1), atol=5e-3, rtol=5e-3)

    # Case 2: bf16 + ragged sequence (S=250, ts=128): hidden tensor is NOT padded;
    # the in-kernel select kills the out-of-bounds tail of the last seq block.
    B, S, H = 2, 250, 128
    h2 = jax.random.normal(k3, (B, S, H), dtype=jnp.bfloat16)
    m2 = (jax.random.uniform(k4, (B, S)) > 0.5).astype(jnp.float32)
    out2 = jax.block_until_ready(mean_pooling(h2, m2, seq_tile=128))
    assert out2.shape == (B, H)
    assert jnp.allclose(out2, reference(h2, m2), atol=5e-3, rtol=5e-3)

    # Case 3: ragged batch (B=3, tb=2): clamped boundary DMA + dropped OOB writes, no padding.
    B, S, H = 3, 64, 256
    h3 = jax.random.normal(k5, (B, S, H), dtype=jnp.float32)
    m3_in = (jax.random.uniform(k6, (B, S)) > 0.4).astype(jnp.float32)
    out3 = jax.block_until_ready(mean_pooling(h3, m3_in))
    assert out3.shape == (B, H)
    assert jnp.allclose(out3, reference(h3, m3_in), atol=5e-3, rtol=5e-3)

    # Case 4: B=1 -> lane-dense H split (two H/2 blocks) so both v7x cores get work.
    B, S, H = 1, 16, 256
    h4 = jax.random.normal(k7, (B, S, H), dtype=jnp.float32)
    m4 = (jax.random.uniform(k8, (B, S)) > 0.3).astype(jnp.float32)
    out4 = jax.block_until_ready(mean_pooling(h4, m4))
    assert out4.shape == (B, H)
    assert jnp.allclose(out4, reference(h4, m4), atol=5e-3, rtol=5e-3)

    print("KERNEL_OK")
</pallas_src>

<mosaic_0001>
module attributes {stable_mosaic.version = 11 : i64} {
  func.func @_mean_pool_kernel(%arg0: i32, %arg1: i32, %arg2: i32, %arg3: memref<1x8x32xf32, #tpu.memory_space<vmem>>, %arg4: memref<1x1x8xf32, #tpu.memory_space<vmem>>, %arg5: memref<1x1x1xf32, #tpu.memory_space<vmem>>, %arg6: memref<1x1x32xf32, #tpu.memory_space<vmem>>) attributes {dimension_semantics = [#tpu.dimension_semantics<parallel>, #tpu.dimension_semantics<parallel>, #tpu.dimension_semantics<arbitrary>], iteration_bounds = array<i64: 2, 1, 1>, scalar_prefetch = 0 : i64, scratch_operands = 0 : i64, tpu.core_type = #tpu.core_type<tc>, window_params = [{transform_indices = @transform_0, window_bounds = array<i64: 1, 8, 32>}, {transform_indices = @transform_1, window_bounds = array<i64: 1, 1, 8>}, {transform_indices = @transform_2, window_bounds = array<i64: 1, 1, 1>}, {transform_indices = @transform_3, window_bounds = array<i64: 1, 1, 32>}]} {
    %c0_i32 = arith.constant 0 : i32
    %0 = arith.cmpi eq, %arg2, %c0_i32 : i32
    %1 = arith.extui %0 : i1 to i32
    %c0_i32_0 = arith.constant 0 : i32
    %2 = arith.cmpi ne, %1, %c0_i32_0 : i32
    scf.if %2 {
      %cst_14 = arith.constant 0.000000e+00 : f32
      %12 = vector.broadcast %cst_14 : f32 to vector<1x1x32xf32>
      %c0_15 = arith.constant 0 : index
      %c0_16 = arith.constant 0 : index
      %c0_17 = arith.constant 0 : index
      %13 = vector.load %arg6[%c0_15, %c0_16, %c0_17] : memref<1x1x32xf32, #tpu.memory_space<vmem>>, vector<1x1x32xf32>
      tpu.vector_store %arg6[%c0_15, %c0_16, %c0_17], %12 {strides = array<i32>} : memref<1x1x32xf32, #tpu.memory_space<vmem>>, vector<1x1x32xf32>,
    } else {
    }
    %c0 = arith.constant 0 : index
    %c0_1 = arith.constant 0 : index
    %c0_2 = arith.constant 0 : index
    %3 = vector.load %arg3[%c0, %c0_1, %c0_2] : memref<1x8x32xf32, #tpu.memory_space<vmem>>, vector<1x8x32xf32>
    %c0_3 = arith.constant 0 : index
    %c0_4 = arith.constant 0 : index
    %c0_5 = arith.constant 0 : index
    %4 = vector.load %arg6[%c0_3, %c0_4, %c0_5] : memref<1x1x32xf32, #tpu.memory_space<vmem>>, vector<1x1x32xf32>
    %c0_6 = arith.constant 0 : index
    %c0_7 = arith.constant 0 : index
    %c0_8 = arith.constant 0 : index
    %5 = vector.load %arg4[%c0_6, %c0_7, %c0_8] : memref<1x1x8xf32, #tpu.memory_space<vmem>>, vector<1x1x8xf32>
    "tpu.trace_start"() <{level = 10 : i32, message = "bqs,bsh->bqh"}> : () -> ()
    %cst = arith.constant dense<0.000000e+00> : vector<1x1x32xf32>
    %6 = tpu.matmul %5, %3, %cst {dimension_numbers = #tpu.dot_dimension_numbers<[2], [1], [1], [2], [0, 0, 0, 1, 1, 2], [0], [0]>} : vector<1x1x8xf32>, vector<1x8x32xf32>, vector<1x1x32xf32> -> vector<1x1x32xf32>
    "tpu.trace_stop"() : () -> ()
    %7 = arith.addf %4, %6 : vector<1x1x32xf32>
    %c0_9 = arith.constant 0 : index
    %c0_10 = arith.constant 0 : index
    %c0_11 = arith.constant 0 : index
    %8 = vector.load %arg6[%c0_9, %c0_10, %c0_11] : memref<1x1x32xf32, #tpu.memory_space<vmem>>, vector<1x1x32xf32>
    tpu.vector_store %arg6[%c0_9, %c0_10, %c0_11], %7 {strides = array<i32>} : memref<1x1x32xf32, #tpu.memory_space<vmem>>, vector<1x1x32xf32>,
    %c0_i32_12 = arith.constant 0 : i32
    %9 = arith.cmpi eq, %arg2, %c0_i32_12 : i32
    %10 = arith.extui %9 : i1 to i32
    %c0_i32_13 = arith.constant 0 : i32
    %11 = arith.cmpi ne, %10, %c0_i32_13 : i32
    scf.if %11 {
      %c0_14 = arith.constant 0 : index
      %c0_15 = arith.constant 0 : index
      %c0_16 = arith.constant 0 : index
      %12 = vector.load %arg6[%c0_14, %c0_15, %c0_16] : memref<1x1x32xf32, #tpu.memory_space<vmem>>, vector<1x1x32xf32>
      %c0_17 = arith.constant 0 : index
      %c0_18 = arith.constant 0 : index
      %c0_19 = arith.constant 0 : index
      %13 = vector.load %arg5[%c0_17, %c0_18, %c0_19] : memref<1x1x1xf32, #tpu.memory_space<vmem>>, vector<1x1x1xf32>
      %14 = vector.broadcast %13 : vector<1x1x1xf32> to vector<1x1x32xf32>
      %15 = arith.mulf %12, %14 : vector<1x1x32xf32>
      %c0_20 = arith.constant 0 : index
      %c0_21 = arith.constant 0 : index
      %c0_22 = arith.constant 0 : index
      %16 = vector.load %arg6[%c0_20, %c0_21, %c0_22] : memref<1x1x32xf32, #tpu.memory_space<vmem>>, vector<1x1x32xf32>
      tpu.vector_store %arg6[%c0_20, %c0_21, %c0_22], %15 {strides = array<i32>} : memref<1x1x32xf32, #tpu.memory_space<vmem>>, vector<1x1x32xf32>,
    } else {
    }
    return
  }
  func.func @transform_0(%arg0: i32, %arg1: i32, %arg2: i32) -> (i32, i32, i32) {
    %c0_i32 = arith.constant 0 : i32
    return %arg0, %arg2, %arg1 : i32, i32, i32
  }
  func.func @transform_1(%arg0: i32, %arg1: i32, %arg2: i32) -> (i32, i32, i32) {
    %c0_i32 = arith.constant 0 : i32
    %c0_i32_0 = arith.constant 0 : i32
    return %arg0, %c0_i32, %arg2 : i32, i32, i32
  }
  func.func @transform_2(%arg0: i32, %arg1: i32, %arg2: i32) -> (i32, i32, i32) {
    %c0_i32 = arith.constant 0 : i32
    %c0_i32_0 = arith.constant 0 : i32
    %c0_i32_1 = arith.constant 0 : i32
    return %arg0, %c0_i32, %c0_i32_0 : i32, i32, i32
  }
  func.func @transform_3(%arg0: i32, %arg1: i32, %arg2: i32) -> (i32, i32, i32) {
    %c0_i32 = arith.constant 0 : i32
    %c0_i32_0 = arith.constant 0 : i32
    return %arg0, %c0_i32, %arg1 : i32, i32, i32
  }
}

</mosaic_0001>

<bundles_post_ra>
// kernel: tpu_custom_call.1
= control target key start
LH: loop header
LB: loop body
LE: loop exit
PB: predicated region body
PF: predicated region fallthrough
CT: control target
= control target key end

     0   :  { %8 = vsyncpa [#allocation3], 0  ;;  %s884_s0 = inlined_call_operand.hbm [shape: f32[2,8,32], index: 0, kind: input, shape index: {}]   ;;  %s885_s1 = inlined_call_operand.vmem [shape: f32[2,1,8], index: 1, kind: input, shape index: {}]   ;;  %s886_s2 = inlined_call_operand.vmem [shape: f32[2,1,1], index: 2, kind: input, shape index: {}]   ;;  %s887_s3 = inlined_call_operand.hbm [shape: f32[2,1,32], index: 3, kind: output, shape index: {}]  }
   0x1   :  { %10 = vsyncpa [#allocation3 + $0x1], 0 }
   0x2   :  { %11 = vsyncpa [#allocation4], 0 }
   0x3   :  { %13 = vsyncpa [#allocation4 + $0x1], 0  ;;  %s692_s12 = smov 0   ;;  %s694_s13 = smov 0  }
   0x4   :  { %s696_s14 = smov 0   ;;  %s698_s15 = smov 0  }
   0x5   :  { %s700_s16 = smov 0   ;;  %s702_s17 = smov 0  }
   0x6 LB: > { %s468_s18 = sadd.s32 4294967295, %s665_s17   ;;  %s469_s19 = sadd.s32 4294967294, %s665_s17   ;;  %s665_s17 = sphi %s702_s17, %s19_s17   ;;  %s661_s16 = sphi %s700_s16, %s903_s16   ;;  %s657_s15 = sphi %s698_s15, %s902_s15   ;;  %s653_s14 = sphi %s696_s14, %s901_s14   ;;  %s649_s13 = sphi %s694_s13, %s900_s13   ;;  %s645_s12 = sphi %s692_s12, %s899_s12  }
   0x7   : > { %s38_s20 = sadd.s32 1, %s661_s16  ;;  %s49_s21 = sadd.s32 1, %s653_s14 }
   0x8   : > { %p40_p0 = scmp.ge.s32.totalorder %s38_s20, 2  ;;  %p56_p1 = scmp.ne.s32.totalorder %s653_s14, %s649_s13 }
   0x9   : > { %p57_p2 = scmp.eq.s32.totalorder %s665_s17, 0  ;;  %p62_p3 = scmp.ne.s32.totalorder %s649_s13, %s645_s12 }
   0xa   : > { %s905_s20 = smov (%p40_p0, %s38_s20), 0  ;;  %p63_p5 = scmp.eq.s32.totalorder %s468_s18, 0 }
   0xb   : > { %p733_p4 = por %p57_p2, %p56_p1  ;;  %s42_s23 = ssub.s32 %s661_s16, %s905_s20 }
   0xc   : > { %p142_p6 = scmp.eq.s32.totalorder %s468_s18, 1  ;;  %p47_p7 = scmp.eq.s32.totalorder %s42_s23, 0 }
   0xd   : > { %p739_p8 = por %p63_p5, %p62_p3  ;;  %p148_p10 = scmp.eq.s32.totalorder %s469_s19, 1 }
   0xe   : > { %p743_p9 = por %p142_p6, %p56_p1  ;;  %p499_p13 = scmp.lt.s32.totalorder %s665_s17, 2 }
   0xf   : > { %s748_s26 = scalar_select %p47_p7, %s653_s14, %s49_s21  }
  0x10   : > { %s891_s25 = scalar_select %p743_p9, 1, 0 }
  0x11   : > { %p750_p11 = por %p148_p10, %p62_p3  ;;  %s168_s28 = sand.u32 1, %s653_s14  }
  0x12   : > { %s472_s29 = sshll.u32 %s168_s28, 3  ;;  %s473_s30 = sshll.u32 %s661_s16, 7 }
  0x13   : > { %s892_s27 = scalar_select %p750_p11, 1, 0 }
  0x14   : > { %s761_s6 = scalar_lea.hbm %s884_s0, %s473_s30  ;;  %s172_s7 = scalar_lea.vmem [#allocation2], %s472_s29 }
  0x15   : > { %s181_s8 = sshll.u32 %s172_s7, 4  ;;  %p767_p0 = pnand %p499_p13, %p733_p4  ;;  %s763_s8 = int_to_ptr.vmem [resolvable:$true] %s181_s8 }
  0x16   : > { %s169_s10 = scalar_lea.sflag [#allocation3], %s168_s28  ;;  %s553_s11 = scalar_lea.hbm %s761_s6, 128 }
  0x17   : > { %p554_p3 = scmp.ne.s32.totalorder %s761_s6, %s553_s11  ;;  %p555_p5 = pneg %p767_p0 }
  0x18   : > { %s558_s21 = scalar_lea.hbm %s884_s0, 256  ;;  %p559_p4 = scmp.lt.u32.totalorder %s761_s6, %s884_s0 }
  0x19   : > { %p556_p6 = pnand %p555_p5, %p554_p3  ;;  %p560_p10 = scmp.lt.u32.totalorder %s558_s21, %s553_s11 }
  0x1a   : > { %p562_p12 = scmp.lt.u32.totalorder %s553_s11, %s761_s6 }
  0x1b   : > { %p557_p7 = pneg %p556_p6  ;;  %p561_p13 = por %p560_p10, %p559_p4 }
  0x1d   : > { %p563_p1 = por %p562_p12, %p561_p13 }
  0x1f   : > { %p564_p2 = pnand %p563_p1, %p557_p7 }
  0x21   : > { %567 = shalt.err (!%p564_p2)
}
  0x22   : > { %s568_s28 = scalar_lea.vmem %s763_s8, 128  ;;  %s667_s29 = smov [#allocation2]  }
  0x23   : > { %p569_p3 = scmp.ne.s32.totalorder %s763_s8, %s568_s28  ;;  %s573_s30 = sshll.u32 %s667_s29, 4  ;;  %s574_s30 = int_to_ptr.vmem [resolvable:$false] %s573_s30 }
  0x24   : > { %s575_s4 = scalar_lea.vmem %s574_s30, 256  ;;  %p576_p9 = scmp.lt.s32.totalorder %s763_s8, %s574_s30 }
  0x25   : > { %p571_p6 = pnand %p569_p3, %p555_p5  ;;  %p577_p4 = scmp.lt.s32.totalorder %s575_s4, %s568_s28 }
  0x27   : > { %p572_p11 = pneg %p571_p6  ;;  %p578_p10 = por %p577_p4, %p576_p9 }
  0x29   : > { %p579_p12 = pnand %p578_p10, %p572_p11 }
  0x2b   : > { %582 = shalt.err (!%p579_p12)
}
  0x2c   : > { %494 = dma.hbm_to_vmem [thread:$0]  (!%p767_p0), %s761_s6, 128, %s763_s8, %s169_s10  }
  0x2d   : > { %p894_p1 = scmp.lt.s32.totalorder %s665_s17, 3  ;;  %p895_p2 = scmp.ge.s32.totalorder %s665_s17, 1 }
  0x2f   : > { %p202_p5 = pnand %p895_p2, %p894_p1 }
  0x30   : > { %s803_s5 = sand.u32 (!%p202_p5), 1, %s649_s13  }
  0x31   : > { %205 = sbr.rel (%p202_p5) target bundleno = 301 (0x12d), region = 32  ;;  %s475_s7 = sshll.u32 (!%p202_p5), %s803_s5, 3 }
  0x32   : > { %s208_s11 = scalar_lea.sflag (!%p202_p5), [#allocation3], %s803_s5  ;;  %s211_s18 = scalar_lea.vmem (!%p202_p5), [#allocation2], %s475_s7 }
  0x38   : > { %636 = dma.done.wait (%p739_p8), %s208_s11, 128  }
  0x39   : > { %638 = vsyncadd (%p739_p8), %s208_s11, 4294967168  ;;  %vm255_vm0 = vcmask 253952   ;;  %p242_p9 = scmp.lt.s32.totalorder %s657_s15, 1  ;;  %s813_s6 = scalar_lea.vmem [#allocation5], %s803_s5  ;;  %v668_v0 = vmov 0.0   ;;  %vm669_vm1 = vmmov 0   ;;  %v347_v5 = vlaneseq }
  0x3a   : > { %256 = vst.msk [vmem:[%s813_s6] sm:$0x1] %vm255_vm0, %v668_v0  ;;  %482 = vmatprep.subr.mxu0 %v668_v0  ;;  %484 = vmatprep.mubr.msk.f32.mxu0 %vm669_vm1, %v668_v0  ;;  %v670_v1 = vmov 0   ;;  %vm260_vm2 = vcmask 64512   ;;  %v257_v2 = vld [vmem:[%s211_s18] sm:$0xff]  ;;  %s477_s23 = sshll.u32 %s657_s15, 4 }
  0x3b   : > { %s243_s8 = scalar_select %p242_p9, %s657_s15, 1  ;;  %552 = vset.pattern.permute.xlu0 %v670_v1  ;;  %483 = vmatpush3.msra.mxu0 %v257_v2  ;;  %v348_v7 = vshrl.u32 %v347_v5, 7 }
  0x3c   : > { %s367_s28 = sshll.u32 %s813_s6, 4  ;;  %s833_s4 = scalar_lea.hbm %s887_s3, %s477_s23  ;;  %s835_s28 = int_to_ptr.vmem [resolvable:$true] %s367_s28 }
  0x3d   : > { %s247_s10 = scalar_lea.vmem %s885_s1, %s243_s8  ;;  %s250_s22 = scalar_lea.vmem %s886_s2, %s243_s8  ;;  %v349_v11 = vsub.s32 0, %v348_v7 }
  0x3e   : > { %v259_v3 = vld [vmem:[%s247_s10] sm:$0x1]  ;;  %s354_s7 = scalar_lea.sflag [#allocation4], %s803_s5  ;;  %s583_s11 = scalar_lea.vmem %s835_s28, 16 }
  0x3f   : > { %v341_v4 = vld [vmem:[%s250_s22] sm:$0x1]  ;;  %485 = vmatmul.mubr.msk.f32.vlgmr.msra.gmra.mrb[0].mxu0 %vm260_vm2, %v259_v3  ;;  %p584_p8 = scmp.ne.s32.totalorder %s835_s28, %s583_s11  ;;  %p896_p11 = scmp.ne.s32.totalorder %s891_s25, 0 }
  0x40   : > { %344 = vperm.xlu0 %552, %v341_v4   ;;  %s671_s15 = smov [#allocation5]  }
  0x41   : > { %v258_v6 = vld [vmem:[%s813_s6] sm:$0x1]  ;;  %p585_p0 = pnand %p584_p8, %p896_p11  ;;  %s587_s18 = sshll.u32 %s671_s15, 4  ;;  %s588_s18 = int_to_ptr.vmem [resolvable:$false] %s587_s18 }
  0x42   : > { %s589_s8 = scalar_lea.vmem %s588_s18, 32  ;;  %p590_p13 = scmp.lt.s32.totalorder %s835_s28, %s588_s18 }
  0x43   : > { %p586_p7 = pneg %p585_p0  ;;  %p591_p3 = scmp.lt.s32.totalorder %s589_s8, %s583_s11 }
  0x45   : > { %p592_p6 = por %p591_p3, %p590_p13 }
  0x47   : > { %p593_p4 = pnand %p592_p6, %p586_p7 }
  0xbf   : > { %v345_v12 = vpop.permute.xlu0 %344 }
  0xc0   : > { %v350_v13 = vrot.slane %v345_v12, %v349_v11 }
 0x112   : > { %v330_v8 = vpop.f32.mrb[0].mxu0 }
 0x113   : > { %v334_v9 = vadd.f32 %v330_v8, %v258_v6  ;;  %v486_v10 = vpop.f32.mrb[1].mxu0 }
 0x115   : > { %336 = vst.msk [vmem:[%s813_s6] sm:$0x1] %vm255_vm0, %v334_v9 }
 0x11c   : > { %v340_v14 = vld [vmem:[%s813_s6] sm:$0x1] }
 0x11d   : > { %v351_v15 = vmul.f32 %v350_v13, %v340_v14 }
 0x11f   : > { %352 = vst.msk [vmem:[%s813_s6] sm:$0x1] %vm255_vm0, %v351_v15 }
 0x120   : > { %596 = shalt.err (!%p593_p4)
}
 0x121   : > { %s597_s5 = scalar_lea.hbm %s833_s4, 16  ;;  %s601_s9 = scalar_lea.hbm %s887_s3, 32 }
 0x122   : > { %p598_p10 = scmp.ne.s32.totalorder %s833_s4, %s597_s5  ;;  %p602_p2 = scmp.lt.u32.totalorder %s833_s4, %s887_s3 }
 0x123   : > { %p603_p5 = scmp.lt.u32.totalorder %s601_s9, %s597_s5  ;;  %p605_p8 = scmp.lt.u32.totalorder %s597_s5, %s833_s4 }
 0x124   : > { %p599_p12 = pnand %p598_p10, %p896_p11 }
 0x125   : > { %p604_p9 = por %p603_p5, %p602_p2 }
 0x126   : > { %p600_p1 = pneg %p599_p12 }
 0x127   : > { %p606_p0 = por %p605_p8, %p604_p9 }
 0x129   : > { %p607_p7 = pnand %p606_p0, %p600_p1 }
 0x12b   : > { %610 = shalt.err (!%p607_p7)
}
 0x12c   : > { %489 = dma.vmem_to_hbm [thread:$0]  (%p896_p11), %s835_s28, 16, %s833_s4, %s354_s7  }
 0x12d PF: > { %s379_s21 = sand.u32 1, %s645_s12   ;;  %p897_p13 = scmp.ne.s32.totalorder %s892_s27, 0 }
 0x12e   : > { %p898_p3 = scmp.ge.s32.totalorder %s665_s17, 2  ;;  %s380_s22 = scalar_lea.sflag [#allocation4], %s379_s21 }
 0x130   : > { %p496_p6 = pnand %p898_p3, %p897_p13 }
 0x132   : > { %640 = dma.done.wait (!%p496_p6), %s380_s22, 16  }
 0x133   : > { %642 = vsyncadd (!%p496_p6), %s380_s22, 4294967280  ;;  %s19_s17 = sadd.s32 1, %s665_s17   ;;  %s899_s12 = smov %s649_s13 }
 0x134   : > { %p16_p4 = scmp.ge.s32.totalorder %s19_s17, 4   ;;  %s900_s13 = smov %s653_s14 }
 0x135   : > { %s901_s14 = smov %s748_s26  ;;  %s902_s15 = smov %s661_s16 }
 0x136   : > { %s903_s16 = smov %s905_s20  ;;  %18 = sbr.rel (!%p16_p4) target bundleno = 6 (0x6), region = 91 }
 0x13d   :  { %384 = vsyncpa [#allocation3], 1 }
 0x13e   :  { %386 = vsyncpa [#allocation3 + $0x1], 1 }
 0x13f   :  { %387 = vsyncpa [#allocation4], 1 }
 0x140   :  { %389 = vsyncpa [#allocation4 + $0x1], 1 }

</bundles_post_ra>
